<compile_context>
chip_gen: v6e
topology: v6e:2x2x1
jax: 0.10.0
libtpu: 0.0.40
codegen_flags: <defaults>
</compile_context>

<pallas_src>
import functools
import re
from typing import NamedTuple

import jax
import jax.numpy as jnp
from jax.experimental import pallas as pl
from jax.experimental.pallas import tpu as pltpu

EPS = 1e-5  # PyTorch InstanceNorm2d default eps


def _round_up(x, m):
    return (x + m - 1) // m * m


def _tpu_generation():
    try:
        kind = jax.devices()[0].device_kind
    except Exception:
        return 6
    m = re.search(r"(\d+)", kind)
    return int(m.group(1)) if m else 6


def _choose_o_tile(out2_pad, gen):
    # On v7x split the output columns so both TensorCores stream disjoint
    # column-blocks of Wl; on single-TC chips keep one block (less step overhead).
    if gen >= 7 and out2_pad >= 256:
        for cand in (512, 256, 128):
            if out2_pad % cand == 0 and out2_pad // cand >= 2:
                return cand
    return out2_pad


def _choose_tile_hw(c, o_tile, hw, gen):
    # Bytes of one tile's inputs per HW row: Wl bf16 row slice + x f32 column.
    per_row = o_tile * 2 + c * 4
    if gen >= 7:
        per_buf = 20 << 20          # 2x ~20 MiB Wl buffers inside 64 MiB VMEM
    elif gen == 6:
        per_buf = 32 << 20          # big tiles; 128 MiB physical VMEM
    else:
        per_buf = 3 << 20           # stay under the 16 MiB default scoped limit
    tile_hw = max(128, (per_buf // per_row) // 128 * 128)
    return min(tile_hw, _round_up(hw, 128))


def _vmem_limit_bytes(gen):
    if gen >= 7:
        return 56 << 20
    if gen == 6:
        return 96 << 20
    return None                     # v5e/older: keep the default scoped limit


class NBlockParams(NamedTuple):
    wc: jax.Array       # (C, 1)  f32   conv 1x1 weights
    wl_t: jax.Array     # (hw_pad, out2_pad) bf16  pre-transposed linear weight
    bl: jax.Array       # (1, out2_pad) f32  linear bias (lane-padded)
    cs: jax.Array       # (1, out2_pad) f32  colsum(Wl)  (precomputed)
    hw: int             # true n_feat (= H*W)
    out2: int           # out_feat**2
    tile_hw: int
    o_tile: int
    vmem_limit: int | None


def nblock_prepare_params(conv_w, lin_w, lin_b, tile_hw=None):
    """One-time parameter prep, hoisted out of the per-call path:
       - conv 1x1 weight -> (C, 1) f32 for a single broadcast-multiply,
       - linear weight pre-transposed to (n_feat, out2), stored bf16, columns
         zero-padded to x128 and rows zero-padded to a multiple of tile_hw,
       - linear bias zero-padded to the same lane width (f32),
       - colsum(Wl) precomputed in f32 (weight constant -> not recomputed in-kernel).
       The conv bias is intentionally dropped: it cancels exactly under
       affine-free InstanceNorm."""
    c = conv_w.shape[1]
    out2, n_feat = lin_w.shape
    out2_pad = _round_up(out2, 128)
    gen = _tpu_generation()
    o_tile = _choose_o_tile(out2_pad, gen)
    if tile_hw is None:
        tile_hw = _choose_tile_hw(c, o_tile, n_feat, gen)
    tile_hw = max(128, tile_hw - tile_hw % 128)
    hw_pad = _round_up(n_feat, tile_hw)

    wc = conv_w.reshape(c, 1).astype(jnp.float32)
    wl_t = jnp.zeros((hw_pad, out2_pad), jnp.bfloat16).at[:n_feat, :out2].set(
        lin_w.T.astype(jnp.bfloat16))
    bl = jnp.zeros((1, out2_pad), jnp.float32).at[0, :out2].set(
        lin_b.astype(jnp.float32))
    # Column sums of the bf16-rounded weight (padded rows are zero -> exact).
    cs = jnp.sum(wl_t.astype(jnp.float32), axis=0, keepdims=True)
    return NBlockParams(wc, wl_t, bl, cs, n_feat, out2, tile_hw, o_tile,
                        _vmem_limit_bytes(gen))


def _nblock_kernel(hw, wc_ref, x_ref, wl_ref, bl_ref, cs_ref, o_ref,
                   z_acc, s1_acc, s2_acc):
    # wc_ref : (C, 1)          VMEM f32  conv 1x1 weights (resident)
    # x_ref  : (C, tile_hw)    VMEM f32  input tile
    # wl_ref : (tile_hw, O)    VMEM bf16 linear-weight tile (pre-transposed)
    # bl_ref : (1, O)          VMEM f32  linear bias block
    # cs_ref : (1, O)          VMEM f32  colsum(Wl) block (precomputed)
    # o_ref  : (1, O)          VMEM f32  output block
    # scratch: z_acc (1,O) f32 | s1,s2 (1,1) f32
    k = pl.program_id(1)  # reduction axis over HW tiles (inner, "arbitrary")

    @pl.when(k == 0)
    def _init():
        z_acc[...] = jnp.zeros_like(z_acc)
        s1_acc[...] = jnp.zeros_like(s1_acc)
        s2_acc[...] = jnp.zeros_like(s2_acc)

    # 1x1 conv (dim -> 1 channel): broadcast-multiply + sublane reduce.
    y = jnp.sum(wc_ref[...] * x_ref[...], axis=0, keepdims=True)  # (1, tile_hw) f32

    # Spatial moments for InstanceNorm (folded into the finalize step).
    s1_acc[...] += jnp.sum(y, axis=-1, keepdims=True)
    s2_acc[...] += jnp.sum(y * y, axis=-1, keepdims=True)

    # GEMV partial: y @ Wl (bf16 operands, f32 accumulate on the MXU).
    wl = wl_ref[...]
    z_acc[...] += jnp.dot(y.astype(wl.dtype), wl,
                          preferred_element_type=jnp.float32)

    @pl.when(k == pl.num_programs(1) - 1)
    def _finalize():
        inv_hw = jnp.float32(1.0 / hw)
        mean = s1_acc[...] * inv_hw                  # (1,1)
        var = s2_acc[...] * inv_hw - mean * mean     # biased variance
        scale = jax.lax.rsqrt(var + EPS)
        z = (z_acc[...] - mean * cs_ref[...]) * scale + bl_ref[...]
        o_ref[...] = z.astype(o_ref.dtype)


def nblock_forward(x, params: NBlockParams, out_feat):
    """x: (1, C, H, W) f32 (NCHW, like PyTorch). Returns (1, 1, out_feat, out_feat)."""
    n, c, h, w = x.shape
    assert n == 1, "NBlock's final reshape assumes batch size 1"
    hw = h * w
    assert hw == params.hw, "n_feat must equal H*W"
    out2 = out_feat * out_feat
    assert out2 == params.out2

    hw_pad, out2_pad = params.wl_t.shape
    tile_hw, o_tile = params.tile_hw, params.o_tile

    # Only the (tiny) activation is padded per call; the weight was padded once
    # at prep time. Zero padding is exact: padded columns contribute 0 to every
    # accumulator.
    x2d = x.reshape(c, hw).astype(jnp.float32)
    if hw_pad != hw:
        x2d = jnp.pad(x2d, ((0, 0), (0, hw_pad - hw)))

    compiler_kwargs = dict(dimension_semantics=("parallel", "arbitrary"))
    if params.vmem_limit is not None:
        compiler_kwargs["vmem_limit_bytes"] = params.vmem_limit

    out = pl.pallas_call(
        functools.partial(_nblock_kernel, hw),
        out_shape=jax.ShapeDtypeStruct((1, out2_pad), jnp.float32),
        grid=(out2_pad // o_tile, hw_pad // tile_hw),
        in_specs=[
            pl.BlockSpec((c, 1), lambda j, k: (0, 0)),            # conv weights
            pl.BlockSpec((c, tile_hw), lambda j, k: (0, k)),      # x tile
            pl.BlockSpec((tile_hw, o_tile), lambda j, k: (k, j)), # Wl tile (bf16)
            pl.BlockSpec((1, o_tile), lambda j, k: (0, j)),       # bias block
            pl.BlockSpec((1, o_tile), lambda j, k: (0, j)),       # colsum(Wl) block
        ],
        out_specs=pl.BlockSpec((1, o_tile), lambda j, k: (0, j)),
        scratch_shapes=[
            pltpu.VMEM((1, o_tile), jnp.float32),  # z accumulator
            pltpu.VMEM((1, 1), jnp.float32),       # sum(y)
            pltpu.VMEM((1, 1), jnp.float32),       # sum(y^2)
        ],
        compiler_params=pltpu.CompilerParams(**compiler_kwargs),
    )(params.wc, x2d, params.wl_t, params.bl, params.cs)

    return out[:, :out2].reshape(1, 1, out_feat, out_feat)


if __name__ == "__main__":
    # Small shapes consistent with the module: batch=1 (the final reshape implies
    # it), dim=4 channels, 32x32 spatial -> n_feat=1024, out_feat=8 (<32 branch).
    # TODO(synk): the out_feat >= 32 branch (conv3x3 + Upsample) is not implemented.
    dim, H, W = 4, 32, 32
    n_feat = H * W
    out_feat = 8
    init_gain = 0.02

    key = jax.random.PRNGKey(0)
    k_x, k_cw, k_cb, k_lw, k_lb = jax.random.split(key, 5)

    x = jax.random.normal(k_x, (1, dim, H, W), dtype=jnp.float32)
    conv_w = init_gain * jax.random.normal(k_cw, (1, dim, 1, 1), dtype=jnp.float32)
    conv_b = 0.1 * jax.random.normal(k_cb, (1,), dtype=jnp.float32)   # cancels in InstanceNorm
    lin_w = init_gain * jax.random.normal(k_lw, (out_feat * out_feat, n_feat), dtype=jnp.float32)
    lin_b = 0.01 * jax.random.normal(k_lb, (out_feat * out_feat,), dtype=jnp.float32)

    # One-time parameter prep (transpose + bf16 + padding + colsum, out of hot path).
    # tile_hw=256 -> 4-step reduction: exercises the cross-tile accumulation path.
    params = nblock_prepare_params(conv_w, lin_w, lin_b, tile_hw=256)

    y_out = nblock_forward(x, params, out_feat)
    jax.block_until_ready(y_out)
    assert y_out.shape == (1, 1, out_feat, out_feat)

    # Reference mirroring the PyTorch forward (conv bias included to demonstrate
    # that it cancels). Uses the same bf16-rounded linear weight the kernel sees.
    x2d = x.reshape(dim, n_feat)
    yref = conv_w.reshape(1, dim) @ x2d + conv_b.reshape(1, 1)
    m = yref.mean(axis=-1, keepdims=True)
    v = ((yref - m) ** 2).mean(axis=-1, keepdims=True)
    yn = (yref - m) / jnp.sqrt(v + EPS)
    wl_f32 = params.wl_t[:n_feat, :out_feat * out_feat].astype(jnp.float32)
    ref = yn @ wl_f32 + lin_b.reshape(1, -1)
    ref = ref.reshape(1, 1, out_feat, out_feat)

    max_err = float(jnp.max(jnp.abs(y_out - ref)))
    assert jnp.allclose(y_out, ref, atol=1e-2, rtol=1e-2), max_err
    print("KERNEL_OK")
</pallas_src>

<mosaic_0001>
module attributes {stable_mosaic.version = 11 : i64} {
  func.func @_nblock_kernel(%arg0: i32, %arg1: i32, %arg2: memref<4x1xf32, #tpu.memory_space<vmem>>, %arg3: memref<4x256xf32, #tpu.memory_space<vmem>>, %arg4: memref<256x128xbf16, #tpu.memory_space<vmem>>, %arg5: memref<1x128xf32, #tpu.memory_space<vmem>>, %arg6: memref<1x128xf32, #tpu.memory_space<vmem>>, %arg7: memref<1x128xf32, #tpu.memory_space<vmem>>, %arg8: memref<1x128xf32, #tpu.memory_space<vmem>>, %arg9: memref<1x1xf32, #tpu.memory_space<vmem>>, %arg10: memref<1x1xf32, #tpu.memory_space<vmem>>) attributes {dimension_semantics = [#tpu.dimension_semantics<parallel>, #tpu.dimension_semantics<arbitrary>], iteration_bounds = array<i64: 1, 4>, scalar_prefetch = 0 : i64, scratch_operands = 3 : i64, tpu.core_type = #tpu.core_type<tc>, window_params = [{pipeline_mode = #tpu.pipeline_mode<synchronous>, transform_indices = @transform_0, window_bounds = array<i64: 4, 1>}, {transform_indices = @transform_1, window_bounds = array<i64: 4, 256>}, {transform_indices = @transform_2, window_bounds = array<i64: 256, 128>}, {transform_indices = @transform_3, window_bounds = array<i64: 1, 128>}, {transform_indices = @transform_4, window_bounds = array<i64: 1, 128>}, {transform_indices = @transform_5, window_bounds = array<i64: 1, 128>}]} {
    %c0_i32 = arith.constant 0 : i32
    %0 = arith.cmpi eq, %arg1, %c0_i32 : i32
    %1 = arith.extui %0 : i1 to i32
    %c0_i32_0 = arith.constant 0 : i32
    %2 = arith.cmpi ne, %1, %c0_i32_0 : i32
    scf.if %2 {
      %cst_22 = arith.constant 0.000000e+00 : f32
      %29 = vector.broadcast %cst_22 : f32 to vector<1x128xf32>
      %c0_23 = arith.constant 0 : index
      %c0_24 = arith.constant 0 : index
      %30 = vector.load %arg8[%c0_23, %c0_24] : memref<1x128xf32, #tpu.memory_space<vmem>>, vector<1x128xf32>
      tpu.vector_store %arg8[%c0_23, %c0_24], %29 {strides = array<i32>} : memref<1x128xf32, #tpu.memory_space<vmem>>, vector<1x128xf32>,
      %cst_25 = arith.constant 0.000000e+00 : f32
      %31 = vector.broadcast %cst_25 : f32 to vector<1x1xf32>
      %c0_26 = arith.constant 0 : index
      %c0_27 = arith.constant 0 : index
      %32 = vector.load %arg9[%c0_26, %c0_27] : memref<1x1xf32, #tpu.memory_space<vmem>>, vector<1x1xf32>
      tpu.vector_store %arg9[%c0_26, %c0_27], %31 {strides = array<i32>} : memref<1x1xf32, #tpu.memory_space<vmem>>, vector<1x1xf32>,
      %cst_28 = arith.constant 0.000000e+00 : f32
      %33 = vector.broadcast %cst_28 : f32 to vector<1x1xf32>
      %c0_29 = arith.constant 0 : index
      %c0_30 = arith.constant 0 : index
      %34 = vector.load %arg10[%c0_29, %c0_30] : memref<1x1xf32, #tpu.memory_space<vmem>>, vector<1x1xf32>
      tpu.vector_store %arg10[%c0_29, %c0_30], %33 {strides = array<i32>} : memref<1x1xf32, #tpu.memory_space<vmem>>, vector<1x1xf32>,
    } else {
    }
    %c0 = arith.constant 0 : index
    %c0_1 = arith.constant 0 : index
    %3 = vector.load %arg2[%c0, %c0_1] : memref<4x1xf32, #tpu.memory_space<vmem>>, vector<4x1xf32>
    %c0_2 = arith.constant 0 : index
    %c0_3 = arith.constant 0 : index
    %4 = vector.load %arg3[%c0_2, %c0_3] : memref<4x256xf32, #tpu.memory_space<vmem>>, vector<4x256xf32>
    %5 = vector.broadcast %3 : vector<4x1xf32> to vector<4x256xf32>
    %6 = arith.mulf %5, %4 : vector<4x256xf32>
    %cst = arith.constant dense<0.000000e+00> : vector<256xf32>
    %7 = vector.multi_reduction <add>, %6, %cst [0] : vector<4x256xf32> to vector<256xf32>
    %8 = vector.shape_cast %7 : vector<256xf32> to vector<1x256xf32>
    %c0_4 = arith.constant 0 : index
    %c0_5 = arith.constant 0 : index
    %9 = vector.load %arg9[%c0_4, %c0_5] : memref<1x1xf32, #tpu.memory_space<vmem>>, vector<1x1xf32>
    %cst_6 = arith.constant dense<0.000000e+00> : vector<1xf32>
    %10 = vector.multi_reduction <add>, %8, %cst_6 [1] : vector<1x256xf32> to vector<1xf32>
    %11 = vector.shape_cast %10 : vector<1xf32> to vector<1x1xf32>
    %12 = arith.addf %9, %11 : vector<1x1xf32>
    %c0_7 = arith.constant 0 : index
    %c0_8 = arith.constant 0 : index
    %13 = vector.load %arg9[%c0_7, %c0_8] : memref<1x1xf32, #tpu.memory_space<vmem>>, vector<1x1xf32>
    tpu.vector_store %arg9[%c0_7, %c0_8], %12 {strides = array<i32>} : memref<1x1xf32, #tpu.memory_space<vmem>>, vector<1x1xf32>,
    %c0_9 = arith.constant 0 : index
    %c0_10 = arith.constant 0 : index
    %14 = vector.load %arg10[%c0_9, %c0_10] : memref<1x1xf32, #tpu.memory_space<vmem>>, vector<1x1xf32>
    %15 = arith.mulf %8, %8 : vector<1x256xf32>
    %cst_11 = arith.constant dense<0.000000e+00> : vector<1xf32>
    %16 = vector.multi_reduction <add>, %15, %cst_11 [1] : vector<1x256xf32> to vector<1xf32>
    %17 = vector.shape_cast %16 : vector<1xf32> to vector<1x1xf32>
    %18 = arith.addf %14, %17 : vector<1x1xf32>
    %c0_12 = arith.constant 0 : index
    %c0_13 = arith.constant 0 : index
    %19 = vector.load %arg10[%c0_12, %c0_13] : memref<1x1xf32, #tpu.memory_space<vmem>>, vector<1x1xf32>
    tpu.vector_store %arg10[%c0_12, %c0_13], %18 {strides = array<i32>} : memref<1x1xf32, #tpu.memory_space<vmem>>, vector<1x1xf32>,
    %c0_14 = arith.constant 0 : index
    %c0_15 = arith.constant 0 : index
    %20 = vector.load %arg4[%c0_14, %c0_15] : memref<256x128xbf16, #tpu.memory_space<vmem>>, vector<256x128xbf16>
    %c0_16 = arith.constant 0 : index
    %c0_17 = arith.constant 0 : index
    %21 = vector.load %arg8[%c0_16, %c0_17] : memref<1x128xf32, #tpu.memory_space<vmem>>, vector<1x128xf32>
    %22 = arith.truncf %8 : vector<1x256xf32> to vector<1x256xbf16>
    %cst_18 = arith.constant dense<0.000000e+00> : vector<1x128xf32>
    %23 = tpu.matmul %22, %20, %cst_18 {dimension_numbers = #tpu.dot_dimension_numbers<[1], [0], [0], [1], [0, 0, 1, 1], [], []>} : vector<1x256xbf16>, vector<256x128xbf16>, vector<1x128xf32> -> vector<1x128xf32>
    %24 = arith.addf %21, %23 : vector<1x128xf32>
    %c0_19 = arith.constant 0 : index
    %c0_20 = arith.constant 0 : index
    %25 = vector.load %arg8[%c0_19, %c0_20] : memref<1x128xf32, #tpu.memory_space<vmem>>, vector<1x128xf32>
    tpu.vector_store %arg8[%c0_19, %c0_20], %24 {strides = array<i32>} : memref<1x128xf32, #tpu.memory_space<vmem>>, vector<1x128xf32>,
    %c3_i32 = arith.constant 3 : i32
    %26 = arith.cmpi eq, %arg1, %c3_i32 : i32
    %27 = arith.extui %26 : i1 to i32
    %c0_i32_21 = arith.constant 0 : i32
    %28 = arith.cmpi ne, %27, %c0_i32_21 : i32
    scf.if %28 {
      %c0_22 = arith.constant 0 : index
      %c0_23 = arith.constant 0 : index
      %29 = vector.load %arg9[%c0_22, %c0_23] : memref<1x1xf32, #tpu.memory_space<vmem>>, vector<1x1xf32>
      %cst_24 = arith.constant 9.765625E-4 : f32
      %30 = vector.broadcast %cst_24 : f32 to vector<1x1xf32>
      %31 = arith.mulf %29, %30 : vector<1x1xf32>
      %c0_25 = arith.constant 0 : index
      %c0_26 = arith.constant 0 : index
      %32 = vector.load %arg10[%c0_25, %c0_26] : memref<1x1xf32, #tpu.memory_space<vmem>>, vector<1x1xf32>
      %cst_27 = arith.constant 9.765625E-4 : f32
      %33 = vector.broadcast %cst_27 : f32 to vector<1x1xf32>
      %34 = arith.mulf %32, %33 : vector<1x1xf32>
      %35 = arith.mulf %31, %31 : vector<1x1xf32>
      %36 = arith.subf %34, %35 : vector<1x1xf32>
      %cst_28 = arith.constant 9.99999974E-6 : f32
      %37 = vector.broadcast %cst_28 : f32 to vector<1x1xf32>
      %38 = arith.addf %36, %37 : vector<1x1xf32>
      %39 = math.rsqrt %38 : vector<1x1xf32>
      %c0_29 = arith.constant 0 : index
      %c0_30 = arith.constant 0 : index
      %40 = vector.load %arg8[%c0_29, %c0_30] : memref<1x128xf32, #tpu.memory_space<vmem>>, vector<1x128xf32>
      %c0_31 = arith.constant 0 : index
      %c0_32 = arith.constant 0 : index
      %41 = vector.load %arg6[%c0_31, %c0_32] : memref<1x128xf32, #tpu.memory_space<vmem>>, vector<1x128xf32>
      %42 = vector.broadcast %31 : vector<1x1xf32> to vector<1x128xf32>
      %43 = arith.mulf %42, %41 : vector<1x128xf32>
      %44 = arith.subf %40, %43 : vector<1x128xf32>
      %45 = vector.broadcast %39 : vector<1x1xf32> to vector<1x128xf32>
      %46 = arith.mulf %44, %45 : vector<1x128xf32>
      %c0_33 = arith.constant 0 : index
      %c0_34 = arith.constant 0 : index
      %47 = vector.load %arg5[%c0_33, %c0_34] : memref<1x128xf32, #tpu.memory_space<vmem>>, vector<1x128xf32>
      %48 = arith.addf %46, %47 : vector<1x128xf32>
      %c0_35 = arith.constant 0 : index
      %c0_36 = arith.constant 0 : index
      %49 = vector.load %arg7[%c0_35, %c0_36] : memref<1x128xf32, #tpu.memory_space<vmem>>, vector<1x128xf32>
      tpu.vector_store %arg7[%c0_35, %c0_36], %48 {strides = array<i32>} : memref<1x128xf32, #tpu.memory_space<vmem>>, vector<1x128xf32>,
    } else {
    }
    return
  }
  func.func @transform_0(%arg0: i32, %arg1: i32) -> (i32, i32) {
    %c0_i32 = arith.constant 0 : i32
    %c0_i32_0 = arith.constant 0 : i32
    %c0_i32_1 = arith.constant 0 : i32
    return %c0_i32, %c0_i32_0 : i32, i32
  }
  func.func @transform_1(%arg0: i32, %arg1: i32) -> (i32, i32) {
    %c0_i32 = arith.constant 0 : i32
    %c0_i32_0 = arith.constant 0 : i32
    return %c0_i32, %arg1 : i32, i32
  }
  func.func @transform_2(%arg0: i32, %arg1: i32) -> (i32, i32) {
    %c0_i32 = arith.constant 0 : i32
    return %arg1, %arg0 : i32, i32
  }
  func.func @transform_3(%arg0: i32, %arg1: i32) -> (i32, i32) {
    %c0_i32 = arith.constant 0 : i32
    %c0_i32_0 = arith.constant 0 : i32
    return %c0_i32, %arg0 : i32, i32
  }
  func.func @transform_4(%arg0: i32, %arg1: i32) -> (i32, i32) {
    %c0_i32 = arith.constant 0 : i32
    %c0_i32_0 = arith.constant 0 : i32
    return %c0_i32, %arg0 : i32, i32
  }
  func.func @transform_5(%arg0: i32, %arg1: i32) -> (i32, i32) {
    %c0_i32 = arith.constant 0 : i32
    %c0_i32_0 = arith.constant 0 : i32
    return %c0_i32, %arg0 : i32, i32
  }
}

</mosaic_0001>

<bundles_post_ra>
// kernel: tpu_custom_call.1
= control target key start
LH: loop header
LB: loop body
LE: loop exit
PB: predicated region body
PF: predicated region fallthrough
CT: control target
= control target key end

     0   :  { %10 = vsyncpa [#allocation6], 0  ;;  %s1205_s0 = inlined_call_operand.vmem [shape: f32[4,1], index: 0, kind: input, shape index: {}]   ;;  %s1206_s1 = inlined_call_operand.hbm [shape: f32[4,1024], index: 1, kind: input, shape index: {}]   ;;  %s1207_s2 = inlined_call_operand.hbm [shape: bf16[1024,128], index: 2, kind: input, shape index: {}]   ;;  %s1208_s3 = inlined_call_operand.vmem [shape: f32[1,128], index: 3, kind: input, shape index: {}]   ;;  %s1209_s4 = inlined_call_operand.vmem [shape: f32[1,128], index: 4, kind: input, shape index: {}]   ;;  %s1210_s5 = inlined_call_operand.hbm [shape: f32[1,128], index: 5, kind: output, shape index: {}]  }
   0x1   :  { %12 = vsyncpa [#allocation6 + $0x1], 0 }
   0x2   :  { %13 = vsyncpa [#allocation9], 0 }
   0x3   :  { %15 = vsyncpa [#allocation9 + $0x1], 0 }
   0x4   :  { %16 = vsyncpa [#allocation7], 0  ;;  %s1031_s18 = smov 0   ;;  %s1033_s19 = smov 0  }
   0x5   :  { %s1035_s20 = smov 0   ;;  %s1037_s21 = smov 0  }
   0x6   :  { %s1039_s22 = smov 0   ;;  %s1041_s23 = smov 0  }
   0x7 LB: > { %s700_s24 = sadd.s32 4294967295, %s991_s23   ;;  %s31_s25 = sadd.s32 1, %s987_s22  ;;  %s991_s23 = sphi %s1041_s23, %s22_s23   ;;  %s987_s22 = sphi %s1039_s22, %s1220_s22   ;;  %s983_s21 = sphi %s1037_s21, %s1219_s21   ;;  %s979_s20 = sphi %s1035_s20, %s1218_s20   ;;  %s975_s19 = sphi %s1033_s19, %s1217_s19   ;;  %s971_s18 = sphi %s1031_s18, %s1216_s18  }
   0x8   : > { %p32_p0 = scmp.ge.s32.totalorder %s31_s25, 4  ;;  %s62_s26 = sadd.s32 1, %s979_s20 }
   0x9   : > { %p69_p1 = scmp.ne.s32.totalorder %s979_s20, %s975_s19  ;;  %p70_p2 = scmp.eq.s32.totalorder %s991_s23, 0 }
   0xa   : > { %s1222_s25 = smov (%p32_p0, %s31_s25), 0  ;;  %p75_p4 = scmp.ne.s32.totalorder %s975_s19, %s971_s18 }
   0xb   : > { %p1067_p3 = por %p70_p2, %p69_p1  ;;  %s59_s28 = ssub.s32 %s987_s22, %s1222_s25 }
   0xc   : > { %p76_p5 = scmp.eq.s32.totalorder %s700_s24, 0  ;;  %p60_p6 = scmp.eq.s32.totalorder %s59_s28, 0 }
   0xd   : > { %p775_p8 = scmp.lt.s32.totalorder %s991_s23, 4  ;;  %s1085_s6 = sand.u32 1, %s979_s20  }
   0xe   : > { %p1076_p7 = por %p76_p5, %p75_p4  ;;  %s736_s7 = sshll.u32 %s987_s22, 7 }
   0xf   : > { %s1082_s30 = scalar_select %p60_p6, %s979_s20, %s62_s26  }
  0x10   : > { %s705_s8 = sshll.u32 %s1085_s6, 3  ;;  %s230_s11 = scalar_lea.hbm %s1206_s1, %s736_s7 }
  0x11   : > { %s224_s12 = scalar_lea.vmem [#allocation5], %s705_s8  ;;  %p1094_p9 = pnand %p775_p8, %p1067_p3 }
  0x12   : > { %s232_s13 = sshll.u32 %s224_s12, 4  ;;  %p711_p10 = scmp.ge.s32.totalorder %s991_s23, 1  ;;  %s233_s13 = int_to_ptr.vmem [resolvable:$true] %s232_s13 }
  0x13   : > { %p259_p11 = scmp.lt.s32.totalorder %s991_s23, 5  ;;  %s221_s15 = scalar_lea.sflag [#allocation6], %s1085_s6 }
  0x14   : > { %p855_p12 = pneg %p1094_p9  ;;  %s866_s16 = scalar_lea.vmem %s233_s13, 128 }
  0x15   : > { %p867_p13 = scmp.ne.s32.totalorder %s233_s13, %s866_s16  ;;  %s993_s17 = smov [#allocation5]  }
  0x16   : > { %s871_s18 = sshll.u32 %s993_s17, 4  ;;  %s872_s18 = int_to_ptr.vmem [resolvable:$false] %s871_s18 }
  0x17   : > { %p869_p0 = pnand %p867_p13, %p855_p12  ;;  %s873_s26 = scalar_lea.vmem %s872_s18, 256 }
  0x18   : > { %p874_p2 = scmp.lt.s32.totalorder %s233_s13, %s872_s18  ;;  %p875_p3 = scmp.lt.s32.totalorder %s873_s26, %s866_s16 }
  0x19   : > { %p870_p1 = pneg %p869_p0 }
  0x1a   : > { %p876_p4 = por %p875_p3, %p874_p2 }
  0x1c   : > { %p877_p5 = pnand %p876_p4, %p870_p1 }
  0x1e   : > { %880 = shalt.err (!%p877_p5)
}
  0x1f   : > { %771 = dma.hbm_to_vmem [thread:$0]  (!%p1094_p9), %s230_s11, 128, %s233_s13, %s221_s15  }
  0x20   : > { %p1112_p6 = pnand %p711_p10, %p259_p11  ;;  %s708_s28 = sshll.u32 %s1085_s6, 7 }
  0x21   : > { %s737_s7 = sshll.u32 %s987_s22, 11  ;;  %s243_s12 = scalar_lea.vmem [#allocation8], %s708_s28 }
  0x22   : > { %s250_s10 = scalar_lea.hbm %s1207_s2, %s737_s7  ;;  %s251_s16 = sshll.u32 %s243_s12, 4  ;;  %s252_s16 = int_to_ptr.vmem [resolvable:$true] %s251_s16 }
  0x23   : > { %s240_s17 = scalar_lea.sflag [#allocation9], %s1085_s6  ;;  %s894_s18 = scalar_lea.vmem %s252_s16, 2048 }
  0x24   : > { %p895_p8 = scmp.ne.s32.totalorder %s252_s16, %s894_s18  ;;  %s994_s11 = smov [#allocation8]  }
  0x25   : > { %s899_s13 = sshll.u32 %s994_s11, 4  ;;  %s900_s13 = int_to_ptr.vmem [resolvable:$false] %s899_s13 }
  0x26   : > { %p897_p13 = pnand %p895_p8, %p855_p12  ;;  %s901_s15 = scalar_lea.vmem %s900_s13, 4096 }
  0x27   : > { %p902_p10 = scmp.lt.s32.totalorder %s252_s16, %s900_s13  ;;  %p903_p11 = scmp.lt.s32.totalorder %s901_s15, %s894_s18 }
  0x28   : > { %p898_p0 = pneg %p897_p13 }
  0x29   : > { %p904_p1 = por %p903_p11, %p902_p10 }
  0x2b   : > { %p905_p2 = pnand %p904_p1, %p898_p0 }
  0x2d   : > { %908 = shalt.err (!%p905_p2)
}
  0x2e   : > { %s995_s26 = smov 64   ;;  %s996_s28 = smov 4  }
  0x2f   : > { %774 = dma.hbm_to_vmem [thread:$0]  (!%p1094_p9), %s250_s10, 2048, %s252_s16, %s240_s17, %s995_s26, %s995_s26, %s996_s28  }
  0x30   : > { %263 = sbr.rel (%p1112_p6) target bundleno = 580 (0x244), region = 40  ;;  %s265_s6 = sand.u32 (!%p1112_p6), 1, %s975_s19  }
  0x31   : > { %s712_s7 = sshll.u32 (!%p1112_p6), %s265_s6, 3  ;;  %s266_s8 = scalar_lea.sflag (!%p1112_p6), [#allocation6], %s265_s6 }
  0x32   : > { %s1130_s9 = scalar_lea.vmem (!%p1112_p6), [#allocation5], %s712_s7 }
  0x35   : > { %958 = dma.done.wait (%p1076_p7), %s266_s8, 128  }
  0x36   : > { %960 = vsyncadd (%p1076_p7), %s266_s8, 4294967168  ;;  %s713_s12 = sshll.u32 %s265_s6, 7  ;;  %s275_s18 = scalar_lea.sflag [#allocation9], %s265_s6 }
  0x37   : > { %s1136_s14 = scalar_lea.vmem [#allocation8], %s713_s12 }
  0x38   : > { %962 = dma.done.wait (%p1076_p7), %s275_s18, 2048  }
  0x39   : > { %964 = vsyncadd (%p1076_p7), %s275_s18, 4294965248  ;;  %p714_p9 = scmp.ne.s32.totalorder %s983_s21, 0 }
  0x3b   : > { %323 = sbr.rel (%p714_p9) target bundleno = 67 (0x43), region = 52 }
  0x40   : > { %vm325_vm0 = vcmask 0   ;;  %v997_v0 = vmov 0.0  }
  0x41   : > { %324 = vst [vmem:[#allocation2] sm:$0x1] %v997_v0  ;;  %326 = vst.msk [vmem:[#allocation3] sm:$0x1] %vm325_vm0, %v997_v0 }
  0x42   : > { %327 = vst.msk [vmem:[#allocation4] sm:$0x1] %vm325_vm0, %v997_v0 }
  0x43 PF: > { %v328_v1 = vld [vmem:[%s1205_s0] sm:$0xf]  ;;  %v833_v2 = vld [vmem:[%s1136_s14 + $0x78] sm:$0xff]   ;;  %v998_v3 = vmov 0   ;;  %v839_v9 = vld [vmem:[%s1136_s14 + $0x60] sm:$0xff]   ;;  %vm340_vm1 = vcmask 1043456  }
  0x44   : > { %832 = vset.pattern.permute.xlu0 %v998_v3  ;;  %738 = vmatprep.subr.bf16.mxu0 %v833_v2  ;;  %v834_v4 = vld [vmem:[%s1136_s14 + $0x38] sm:$0xff]   ;;  %v835_v5 = vld [vmem:[%s1136_s14 + $0x70] sm:$0xff]   ;;  %v837_v7 = vld [vmem:[%s1136_s14 + $0x68] sm:$0xff]   ;;  %vm360_vm2 = vcmask 0   ;;  %p731_p7 = scmp.ne.s32.totalorder %s983_s21, 3 }
  0x45   : > { %332 = vperm.xlu0 %832, %v328_v1   ;;  %739 = vmatpush3.bf16.msra.mxu0 %v834_v4  ;;  %v836_v6 = vld [vmem:[%s1136_s14 + $0x30] sm:$0xff]   ;;  %v838_v8 = vld [vmem:[%s1136_s14 + $0x28] sm:$0xff]   ;;  %v840_v10 = vld [vmem:[%s1136_s14 + $0x20] sm:$0xff]  }
  0x46   : > { %740 = vmatprep.subr.bf16.mxu0 %v835_v5  ;;  %v842_v11 = vld [vmem:[%s1136_s14 + $0x58] sm:$0xff]   ;;  %v844_v13 = vld [vmem:[%s1136_s14 + $0x50] sm:$0xff]   ;;  %v846_v15 = vld [vmem:[%s1136_s14 + $0x48] sm:$0xff]  }
  0x47   : > { %v843_v12 = vld [vmem:[%s1136_s14 + $0x18] sm:$0xff]   ;;  %v845_v14 = vld [vmem:[%s1136_s14 + $0x10] sm:$0xff]   ;;  %v847_v16 = vld [vmem:[%s1136_s14 + $0x8] sm:$0xff]  }
  0x48   : > { %v848_v17 = vld [vmem:[%s1136_s14 + $0x40] sm:$0xff]   ;;  %v329_v19 = vld [vmem:[%s1130_s9] sm:$0xff]  ;;  %v355_v44 = vld [vmem:[#allocation3] sm:$0x1] }
  0x49   : > { %741 = vmatpush3.bf16.msra.mxu0 %v836_v6  ;;  %v849_v18 = vld [vmem:[%s1136_s14] sm:$0xff]   ;;  %v336_v20 = vcombine.high %v329_v19, %v329_v19  ;;  %v362_v47 = vld [vmem:[#allocation4] sm:$0x1]  ;;  %v402_v51 = vld [vmem:[#allocation2] sm:$0x1] }
  0x4a   : > { %742 = vmatprep.subr.bf16.mxu0 %v837_v7 }
  0x4d   : > { %743 = vmatpush3.bf16.msra.mxu0 %v838_v8 }
  0x4e   : > { %744 = vmatprep.subr.bf16.mxu0 %v839_v9 }
  0x51   : > { %745 = vmatpush3.bf16.msra.mxu0 %v840_v10 }
  0x52   : > { %746 = vmatprep.subr.bf16.mxu0 %v842_v11 }
  0x55   : > { %747 = vmatpush3.bf16.msra.mxu0 %v843_v12 }
  0x56   : > { %748 = vmatprep.subr.bf16.mxu0 %v844_v13 }
  0x59   : > { %749 = vmatpush3.bf16.msra.mxu0 %v845_v14 }
  0x5a   : > { %750 = vmatprep.subr.bf16.mxu0 %v846_v15 }
  0x5d   : > { %751 = vmatpush3.bf16.msra.mxu0 %v847_v16 }
  0x5e   : > { %752 = vmatprep.subr.bf16.mxu0 %v848_v17 }
  0x61   : > { %753 = vmatpush3.bf16.msra.mxu0 %v849_v18 }
  0xc0   : > { %v333_v21 = vpop.permute.xlu0 %332 }
  0xc1   : > { %v338_v22 = vmul.f32 %v333_v21, %v329_v19  ;;  %v339_v23 = vmul.f32 %v336_v20, %v333_v21 }
  0xc3   : > { %v341_v24 = vsel %vm340_vm1, %v338_v22, 0.0  ;;  %v348_v25 = vsel %vm340_vm1, %v339_v23, 0.0 }
  0xc4   : > { %v342_v26 = vrot.slane %v341_v24, 4  ;;  %v349_v27 = vrot.slane %v348_v25, 4 }
  0xc6   : > { %v343_v28 = vadd.f32 %v342_v26, %v341_v24  ;;  %v350_v29 = vadd.f32 %v349_v27, %v348_v25 }
  0xc8   : > { %v344_v30 = vrot.slane %v343_v28, 2  ;;  %v351_v31 = vrot.slane %v350_v29, 2 }
  0xca   : > { %v345_v32 = vadd.f32 %v344_v30, %v343_v28  ;;  %v352_v33 = vadd.f32 %v351_v31, %v350_v29 }
  0xcc   : > { %v353_v34 = vrot.slane %v352_v33, 1  ;;  %v346_v35 = vrot.slane %v345_v32, 1 }
  0xce   : > { %v354_v36 = vadd.f32 %v353_v34, %v352_v33  ;;  %v347_v37 = vadd.f32 %v346_v35, %v345_v32 }
  0xd0   : > { %v404_v38 = vpack.c.bf16 %v354_v36, %v354_v36  ;;  %v356_v39 = vadd.f32 %v354_v36, %v347_v37  ;;  %v403_v40 = vpack.c.bf16 %v347_v37, %v347_v37  ;;  %v363_v41 = vmul.f32 %v347_v37, %v347_v37 }
  0xd1   : > { %v364_v42 = vmul.f32 %v354_v36, %v354_v36 }
  0xd2   : > { %533 = vmatprep.mubr.bf16.mxu0 %v404_v38  ;;  %357 = vadd.xlane.f32.xlu0 %v356_v39 }
  0xd3   : > { %534 = vmatmul.mubr.bf16.vlgmr.msra.gmra.mxu0 %v403_v40  ;;  %v365_v43 = vadd.f32 %v364_v42, %v363_v41 }
  0xd5   : > { %366 = vadd.xlane.f32.xlu1 %v365_v43 }
 0x15b   : > { %v358_v45 = vpop.xlane.xlu0 %357 }
 0x15c   : > { %v359_v46 = vadd.f32 %v358_v45, %v355_v44 }
 0x15e   : > { %361 = vst.msk [vmem:[#allocation3] sm:$0x1] %vm360_vm2, %v359_v46  ;;  %v367_v48 = vpop.xlane.xlu1 %366 }
 0x15f   : > { %v368_v49 = vadd.f32 %v367_v48, %v362_v47 }
 0x161   : > { %369 = vst.msk [vmem:[#allocation4] sm:$0x1] %vm360_vm2, %v368_v49 }
 0x193   : > { %v754_v50 = vpop.f32.mrf.mxu0 }
 0x195   : > { %v755_v52 = vpop.f32.mrf.mxu0 }
 0x196   : > { %v756_v53 = vadd.f32 %v755_v52, %v754_v50  ;;  %546 = sbr.rel (%p731_p7) target bundleno = 565 (0x235), region = 56 }
 0x197   : > { %v757_v54 = vpop.f32.mrf.mxu0 }
 0x198   : > { %v541_v55 = vadd.f32 %v756_v53, %v402_v51 }
 0x199   : > { %v758_v56 = vpop.f32.mrf.mxu0 }
 0x19a   : > { %542 = vst [vmem:[#allocation2] sm:$0x1] %v541_v55 }
 0x19b   : > { %v547_v57 = vld [vmem:[#allocation3] sm:$0x1]  ;;  %v549_v58 = vld [vmem:[#allocation4] sm:$0x1]  ;;  %v999_v59 = vmov 0   ;;  %v562_v2 = vlaneseq }
 0x19c   : > { %850 = vset.pattern.permute.xlu0 %v999_v59  ;;  %v548_v60 = vmul.f32 0.0009765625, %v547_v57  ;;  %v550_v61 = vmul.f32 0.0009765625, %v549_v58  ;;  %v556_v7 = vld [vmem:[%s1209_s4] sm:$0x1] }
 0x19d   : > { %v563_v3 = vshrl.u32 %v562_v2, 7  ;;  %v578_v13 = vld [vmem:[%s1208_s3] sm:$0x1] }
 0x19e   : > { %559 = vperm.xlu0 %850, %v548_v60   ;;  %v551_v62 = vmul.f32 %v548_v60, %v548_v60 }
 0x19f   : > { %v564_v4 = vsub.s32 0, %v563_v3 }
 0x1a0   : > { %v552_v63 = vsub.f32 %v550_v61, %v551_v62 }
 0x1a1   : > { %v555_v9 = vld [vmem:[#allocation2] sm:$0x1] }
 0x1a2   : > { %v553_v0 = vadd.f32 1e-05, %v552_v63 }
 0x1a4   : > { %851 = vrsqrt.f32 %v553_v0 }
 0x1b1   : > { %v852_v1 = vpop.eup %851 }
 0x1b2   : > { %570 = vperm.xlu0 %850, %v852_v1  }
 0x219   : > { %v560_v5 = vpop.permute.xlu0 %559 }
 0x21a   : > { %v565_v6 = vrot.slane %v560_v5, %v564_v4 }
 0x21c   : > { %v566_v8 = vmul.f32 %v565_v6, %v556_v7 }
 0x21e   : > { %v567_v10 = vsub.f32 %v555_v9, %v566_v8 }
 0x22d   : > { %v571_v11 = vpop.permute.xlu0 %570 }
 0x22e   : > { %v576_v12 = vrot.slane %v571_v11, %v564_v4 }
 0x230   : > { %v577_v14 = vmul.f32 %v576_v12, %v567_v10 }
 0x232   : > { %v579_v15 = vadd.f32 %v578_v13, %v577_v14 }
 0x234   : > { %580 = vst [vmem:[#allocation10] sm:$0x1] %v579_v15 }
 0x235 PF: > { %p1172_p12 = scmp.eq.s32.totalorder %s700_s24, 3  ;;  %s1000_s13 = smov [#allocation10]  }
 0x236   : > { %s590_s15 = sshll.u32 %s1000_s13, 4  ;;  %s591_s15 = int_to_ptr.vmem [resolvable:$true] %s590_s15 }
 0x237   : > { %s909_s26 = scalar_lea.vmem %s591_s15, 16  ;;  %s915_s28 = scalar_lea.vmem %s591_s15, 32 }
 0x238   : > { %p910_p3 = scmp.ne.s32.totalorder %s591_s15, %s909_s26  ;;  %p916_p6 = scmp.lt.s32.totalorder %s591_s15, %s591_s15 }
 0x239   : > { %p917_p8 = scmp.lt.s32.totalorder %s915_s28, %s909_s26 }
 0x23a   : > { %p911_p4 = pnand %p910_p3, %p1172_p12 }
 0x23b   : > { %p918_p13 = por %p917_p8, %p916_p6 }
 0x23c   : > { %p912_p5 = pneg %p911_p4 }
 0x23e   : > { %p919_p0 = pnand %p918_p13, %p912_p5 }
 0x240   : > { %922 = shalt.err (!%p919_p0)
}
 0x241   : > { %765 = dma.vmem_to_hbm [thread:$0]  (%p1172_p12), %s591_s15, 16, %s1210_s5, [#allocation7]  }
 0x242   : > { %966 = dma.done.wait (%p1172_p12), [#allocation7], 16  }
 0x243   : > { %968 = vsyncadd (%p1172_p12), [#allocation7], 4294967280 }
 0x244 PF: > { %s22_s23 = sadd.s32 1, %s991_s23   ;;  %s1216_s18 = smov %s975_s19 }
 0x245   : > { %p19_p10 = scmp.ge.s32.totalorder %s22_s23, 6   ;;  %s1217_s19 = smov %s979_s20 }
 0x246   : > { %s1218_s20 = smov %s1082_s30  ;;  %s1219_s21 = smov %s987_s22 }
 0x247   : > { %s1220_s22 = smov %s1222_s25  ;;  %21 = sbr.rel (!%p19_p10) target bundleno = 7 (0x7), region = 105 }
 0x24c   :  { %603 = vsyncpa [#allocation6], 1 }
 0x24d   :  { %605 = vsyncpa [#allocation6 + $0x1], 1 }
 0x24e   :  { %606 = vsyncpa [#allocation9], 1 }
 0x24f   :  { %608 = vsyncpa [#allocation9 + $0x1], 1 }
 0x250   :  { %609 = vsyncpa [#allocation7], 1 }
 0x251   :  { %611 = vsyncpa [#allocation7 + $0x1], 1 }

</bundles_post_ra>
